<compile_context>
chip_gen: v6e
topology: v6e:2x2x1
jax: 0.10.0
libtpu: 0.0.40
codegen_flags: <defaults>
</compile_context>

<pallas_src>
import functools

import jax
import jax.numpy as jnp
from jax import lax
from jax.experimental import pallas as pl
from jax.experimental.pallas import tpu as pltpu

EPS = 1e-5  # nn.BatchNorm1d default eps


def _round_up(n, m):
    return ((n + m - 1) // m) * m


# ---------------------------------------------------------------------------
# Stage 1: net = fc_0(relu(bn_0(x, c)))   (bn_0 pre-folded into scale/shift)
#          + per-tile partial stats of net for bn_1 (f32, pad lanes masked)
# ---------------------------------------------------------------------------
def _stage1_kernel(x_ref, ss_ref, w_ref, b_ref, net_ref, stats_ref, *, T, tT):
    # x: (C_in, tT)  ss: (C_in, 2) f32 [scale|shift]  w: (C_h, C_in)  b: (C_h,1) f32
    scale = ss_ref[:, 0:1]
    shift = ss_ref[:, 1:2]
    h = jnp.maximum(x_ref[...].astype(jnp.float32) * scale + shift, 0.0)
    net = jnp.dot(w_ref[...], h.astype(w_ref.dtype),
                  preferred_element_type=jnp.float32) + b_ref[...]
    net_ref[...] = net.astype(net_ref.dtype)

    # Partial bn_1 statistics over the *valid* lanes of this tile (f32).
    if T % tT != 0:  # trace-time: only the padded case pays for the mask
        t = pl.program_id(1)
        pos = t * tT + lax.broadcasted_iota(jnp.int32, net.shape, dimension=1)
        net = jnp.where(pos < T, net, 0.0)
    stats_ref[...] = jnp.concatenate(
        [jnp.sum(net, axis=-1, keepdims=True),
         jnp.sum(net * net, axis=-1, keepdims=True)], axis=-1)  # (C_h, 2)


# ---------------------------------------------------------------------------
# Stage 2: out = shortcut(x) + fc_1(relu(bn_1(net, c)))
# ---------------------------------------------------------------------------
def _stage2_kernel_shortcut(x_ref, net_ref, ss_ref, w_ref, b_ref, ws_ref, o_ref):
    scale = ss_ref[:, 0:1]
    shift = ss_ref[:, 1:2]
    h = jnp.maximum(net_ref[...].astype(jnp.float32) * scale + shift, 0.0)
    dx = jnp.dot(w_ref[...], h.astype(w_ref.dtype),
                 preferred_element_type=jnp.float32) + b_ref[...]
    x_s = jnp.dot(ws_ref[...], x_ref[...], preferred_element_type=jnp.float32)
    o_ref[...] = (x_s + dx).astype(o_ref.dtype)


def _stage2_kernel_identity(x_ref, net_ref, ss_ref, w_ref, b_ref, o_ref):
    scale = ss_ref[:, 0:1]
    shift = ss_ref[:, 1:2]
    h = jnp.maximum(net_ref[...].astype(jnp.float32) * scale + shift, 0.0)
    dx = jnp.dot(w_ref[...], h.astype(w_ref.dtype),
                 preferred_element_type=jnp.float32) + b_ref[...]
    o_ref[...] = (x_ref[...].astype(jnp.float32) + dx).astype(o_ref.dtype)


# ---------------------------------------------------------------------------
# Wrapper
# ---------------------------------------------------------------------------
def _fold_cbn(c, wg, bg, wb, bb, mean, var):
    """Fold conditional batch norm into per-(batch, channel) scale/shift (f32)."""
    c32 = c.astype(jnp.float32)
    gamma = c32 @ wg.astype(jnp.float32) + bg.astype(jnp.float32)[None, :]
    beta = c32 @ wb.astype(jnp.float32) + bb.astype(jnp.float32)[None, :]
    inv_std = lax.rsqrt(var + EPS)
    scale = gamma * inv_std[None, :]
    shift = beta - scale * mean[None, :]
    # Packed (B, C, 2) = [scale | shift], kept in f32 regardless of act dtype.
    return jnp.stack([scale, shift], axis=-1)


def cresnet_block_conv1d(x, c, params, *, t_tile=1024):
    """x: (B, size_in, T) in PyTorch NCT layout; c: (B, c_dim). Returns NCT."""
    B, size_in, T = x.shape
    size_h = params['w0'].shape[0]
    size_out = params['w1'].shape[0]
    ws = params.get('ws', None)
    dtype = x.dtype
    itemsize = jnp.dtype(dtype).itemsize

    # Lane-dense T tile (multiple of 128); pad T up to a whole number of tiles.
    tT = _round_up(min(t_tile, _round_up(T, 128)), 128)
    # Keep >=2 total grid steps so both v7x TensorCores get work.
    if B * ((T + tT - 1) // tT) < 2 and T > 128:
        tT = _round_up((T + 1) // 2, 128)
    T_pad = _round_up(T, tT)
    nT = T_pad // tT
    x_p = x if T_pad == T else jnp.pad(x, ((0, 0), (0, 0), (0, T_pad - T)))
    grid = (B, nT)

    # ---- bn_0: training-mode batch statistics over (B, T), folded affine ----
    x32 = x.astype(jnp.float32)
    mean0 = jnp.mean(x32, axis=(0, 2))
    var0 = jnp.var(x32, axis=(0, 2))          # biased, matches BN training
    ss0 = _fold_cbn(c, params['wg0'], params['bg0'],
                    params['wb0'], params['bb0'], mean0, var0)   # (B, C_in, 2) f32
    w0 = params['w0'].astype(dtype)                               # (size_h, size_in)
    b0 = params['b0'][:, None].astype(jnp.float32)                # (size_h, 1) f32

    # VMEM budget: double-buffered feature tiles of the heavier stage + weights.
    est = 2 * tT * (size_in + size_h + size_out) * itemsize
    est += 4 * (size_h * size_in + size_out * size_h + size_out * size_in
                + 2 * (size_in + size_h + size_out))
    vmem_limit = int(min(48 * 2**20, max(32 * 2**20, 4 * est)))
    cp = pltpu.CompilerParams(dimension_semantics=("parallel", "parallel"),
                              vmem_limit_bytes=vmem_limit)

    def feat_spec(C):      # (B, C, T_pad) tiled over (batch, T)
        return pl.BlockSpec((None, C, tT), lambda b, t: (b, 0, t))

    def ss_spec(C):        # packed per-(batch, channel) scale/shift, (B, C, 2)
        return pl.BlockSpec((None, C, 2), lambda b, t: (b, 0, 0))

    def mat_spec(R, Cc):   # small weights / biases, resident (same block)
        return pl.BlockSpec((R, Cc), lambda b, t: (0, 0))

    net, stats = pl.pallas_call(
        functools.partial(_stage1_kernel, T=T, tT=tT),
        grid=grid,
        in_specs=[feat_spec(size_in), ss_spec(size_in),
                  mat_spec(size_h, size_in), mat_spec(size_h, 1)],
        out_specs=(feat_spec(size_h),
                   pl.BlockSpec((None, None, size_h, 2), lambda b, t: (b, t, 0, 0))),
        out_shape=(jax.ShapeDtypeStruct((B, size_h, T_pad), dtype),
                   jax.ShapeDtypeStruct((B, nT, size_h, 2), jnp.float32)),
        compiler_params=cp,
        cost_estimate=pl.CostEstimate(
            flops=2 * B * T_pad * size_in * size_h + 5 * B * T_pad * size_h,
            transcendentals=0,
            bytes_accessed=itemsize * B * T_pad * (size_in + size_h)),
    )(x_p, ss0, w0, b0)

    # ---- bn_1: finish batch statistics from the per-tile partials (f32) ----
    count = float(B * T)
    s1 = jnp.sum(stats[..., 0], axis=(0, 1))          # (size_h,)
    s2 = jnp.sum(stats[..., 1], axis=(0, 1))
    mean1 = s1 / count
    var1 = jnp.maximum(s2 / count - mean1 * mean1, 0.0)
    ss1 = _fold_cbn(c, params['wg1'], params['bg1'],
                    params['wb1'], params['bb1'], mean1, var1)   # (B, size_h, 2) f32
    w1 = params['w1'].astype(dtype)                               # (size_out, size_h)
    b1 = params['b1'][:, None].astype(jnp.float32)                # (size_out, 1) f32

    in_specs2 = [feat_spec(size_in), feat_spec(size_h), ss_spec(size_h),
                 mat_spec(size_out, size_h), mat_spec(size_out, 1)]
    args2 = [x_p, net, ss1, w1, b1]
    flops2 = 2 * B * T_pad * size_h * size_out + 3 * B * T_pad * size_h
    if ws is not None:
        kernel2 = _stage2_kernel_shortcut
        in_specs2.append(mat_spec(size_out, size_in))
        args2.append(ws.astype(dtype))
        flops2 += 2 * B * T_pad * size_in * size_out
    else:
        kernel2 = _stage2_kernel_identity      # identity shortcut: no matmul, no ws DMA

    out = pl.pallas_call(
        kernel2,
        grid=grid,
        in_specs=in_specs2,
        out_specs=feat_spec(size_out),
        out_shape=jax.ShapeDtypeStruct((B, size_out, T_pad), dtype),
        compiler_params=cp,
        cost_estimate=pl.CostEstimate(
            flops=flops2,
            transcendentals=0,
            bytes_accessed=itemsize * B * T_pad * (size_in + size_h + size_out)),
    )(*args2)

    return out if T_pad == T else out[:, :, :T]


# ---------------------------------------------------------------------------
# Pure-JAX reference mirroring the PyTorch forward (training-mode BN)
# ---------------------------------------------------------------------------
def reference(x, c, params):
    x = x.astype(jnp.float32)
    c = c.astype(jnp.float32)

    def cbn(feat, wg, bg, wb, bb):
        gamma = c @ wg + bg[None, :]
        beta = c @ wb + bb[None, :]
        mean = jnp.mean(feat, axis=(0, 2), keepdims=True)
        var = jnp.var(feat, axis=(0, 2), keepdims=True)
        feat_hat = (feat - mean) / jnp.sqrt(var + EPS)
        return gamma[:, :, None] * feat_hat + beta[:, :, None]

    def conv1x1(feat, w, b=None):
        out = jnp.einsum('oc,bct->bot', w, feat)
        return out if b is None else out + b[None, :, None]

    h0 = jax.nn.relu(cbn(x, params['wg0'], params['bg0'],
                         params['wb0'], params['bb0']))
    net = conv1x1(h0, params['w0'], params['b0'])
    h1 = jax.nn.relu(cbn(net, params['wg1'], params['bg1'],
                         params['wb1'], params['bb1']))
    dx = conv1x1(h1, params['w1'], params['b1'])
    x_s = conv1x1(x, params['ws']) if params.get('ws', None) is not None else x
    return x_s + dx


def init_params(key, c_dim, size_in, size_h, size_out):
    # Deterministic synthetic init (shapes follow the module's __init__).
    # NOTE: PyTorch zero-inits fc_1.weight and the CBN conv weights; we use
    # small random values so the whole compute path is exercised.
    ks = jax.random.split(key, 12)
    p = {
        # CBatchNorm1d(c_dim, size_in): conv_gamma / conv_beta (1x1 convs on c)
        'wg0': 0.1 * jax.random.normal(ks[0], (c_dim, size_in), jnp.float32),
        'bg0': 1.0 + 0.1 * jax.random.normal(ks[1], (size_in,), jnp.float32),
        'wb0': 0.1 * jax.random.normal(ks[2], (c_dim, size_in), jnp.float32),
        'bb0': 0.1 * jax.random.normal(ks[3], (size_in,), jnp.float32),
        # fc_0: Conv1d(size_in, size_h, 1) — weight stored (C_out, C_in)
        'w0': 0.1 * jax.random.normal(ks[4], (size_h, size_in), jnp.float32),
        'b0': 0.1 * jax.random.normal(ks[5], (size_h,), jnp.float32),
        # CBatchNorm1d(c_dim, size_h)
        'wg1': 0.1 * jax.random.normal(ks[6], (c_dim, size_h), jnp.float32),
        'bg1': 1.0 + 0.1 * jax.random.normal(ks[7], (size_h,), jnp.float32),
        'wb1': 0.1 * jax.random.normal(ks[8], (c_dim, size_h), jnp.float32),
        'bb1': 0.1 * jax.random.normal(ks[9], (size_h,), jnp.float32),
        # fc_1: Conv1d(size_h, size_out, 1)
        'w1': 0.1 * jax.random.normal(ks[10], (size_out, size_h), jnp.float32),
        'b1': 0.1 * jax.random.normal(ks[11], (size_out,), jnp.float32),
    }
    # shortcut: Conv1d(size_in, size_out, 1, bias=False) only when shapes differ
    if size_in != size_out:
        p['ws'] = 0.1 * jax.random.normal(jax.random.fold_in(key, 99),
                                          (size_out, size_in), jnp.float32)
    return p


if __name__ == "__main__":
    key = jax.random.PRNGKey(0)
    B = 2
    c_dim, size_in, size_h, size_out = 8, 16, 32, 64

    kx, kc, kp = jax.random.split(key, 3)
    c = jax.random.normal(kc, (B, c_dim), jnp.float32)

    params = init_params(kp, c_dim, size_in, size_h, size_out)              # learned shortcut
    params_id = init_params(jax.random.fold_in(kp, 1), c_dim, size_in, size_h, size_in)  # identity

    fwd = jax.jit(cresnet_block_conv1d)                                      # default t_tile=1024
    fwd_small = jax.jit(functools.partial(cresnet_block_conv1d, t_tile=256))  # multi T-tile path

    # Case 1: size_in != size_out, multiple T tiles per batch (stats accumulation path).
    T = 512
    x = jax.random.normal(kx, (B, size_in, T), jnp.float32)
    out = jax.block_until_ready(fwd_small(x, c, params))
    ref = reference(x, c, params)
    assert out.shape == (B, size_out, T), out.shape
    assert jnp.allclose(out, ref, rtol=1e-4, atol=1e-4), \
        float(jnp.max(jnp.abs(out - ref)))

    # Case 2: size_in == size_out -> identity shortcut branch (no ws at all), big tile.
    out_id = jax.block_until_ready(fwd(x, c, params_id))
    ref_id = reference(x, c, params_id)
    assert out_id.shape == (B, size_in, T), out_id.shape
    assert jnp.allclose(out_id, ref_id, rtol=1e-4, atol=1e-4), \
        float(jnp.max(jnp.abs(out_id - ref_id)))

    # Case 3: T not a multiple of 128 -> padded tail must be masked out of bn_1 stats.
    T3 = 500
    x3 = jax.random.normal(jax.random.fold_in(kx, 3), (B, size_in, T3), jnp.float32)
    out3 = jax.block_until_ready(fwd(x3, c, params))
    ref3 = reference(x3, c, params)
    assert out3.shape == (B, size_out, T3), out3.shape
    assert jnp.allclose(out3, ref3, rtol=1e-4, atol=1e-4), \
        float(jnp.max(jnp.abs(out3 - ref3)))

    # Case 4: bf16 activations (v6e/v7x bandwidth lever); scale/shift/stats stay f32.
    x_bf = x.astype(jnp.bfloat16)
    out_bf = jax.block_until_ready(fwd(x_bf, c, params))
    ref_bf = reference(x_bf.astype(jnp.float32), c, params)
    assert out_bf.dtype == jnp.bfloat16
    assert jnp.allclose(out_bf.astype(jnp.float32), ref_bf, rtol=1e-1, atol=1e-1), \
        float(jnp.max(jnp.abs(out_bf.astype(jnp.float32) - ref_bf)))

    print("KERNEL_OK")
</pallas_src>

<mosaic_0001>
module attributes {stable_mosaic.version = 11 : i64} {
  func.func @_stage2_kernel_shortcut(%arg0: i32, %arg1: i32, %arg2: memref<1x16x256xf32, #tpu.memory_space<vmem>>, %arg3: memref<1x32x256xf32, #tpu.memory_space<vmem>>, %arg4: memref<1x32x2xf32, #tpu.memory_space<vmem>>, %arg5: memref<64x32xf32, #tpu.memory_space<vmem>>, %arg6: memref<64x1xf32, #tpu.memory_space<vmem>>, %arg7: memref<64x16xf32, #tpu.memory_space<vmem>>, %arg8: memref<1x64x256xf32, #tpu.memory_space<vmem>>) attributes {dimension_semantics = [#tpu.dimension_semantics<parallel>, #tpu.dimension_semantics<parallel>], iteration_bounds = array<i64: 2, 2>, scalar_prefetch = 0 : i64, scratch_operands = 0 : i64, tpu.core_type = #tpu.core_type<tc>, window_params = [{transform_indices = @transform_0, window_bounds = array<i64: 1, 16, 256>}, {transform_indices = @transform_1, window_bounds = array<i64: 1, 32, 256>}, {transform_indices = @transform_2, window_bounds = array<i64: 1, 32, 2>}, {pipeline_mode = #tpu.pipeline_mode<synchronous>, transform_indices = @transform_3, window_bounds = array<i64: 64, 32>}, {pipeline_mode = #tpu.pipeline_mode<synchronous>, transform_indices = @transform_4, window_bounds = array<i64: 64, 1>}, {pipeline_mode = #tpu.pipeline_mode<synchronous>, transform_indices = @transform_5, window_bounds = array<i64: 64, 16>}, {transform_indices = @transform_6, window_bounds = array<i64: 1, 64, 256>}]} {
    %c0 = arith.constant 0 : index
    %c0_0 = arith.constant 0 : index
    %c0_1 = arith.constant 0 : index
    %0 = vector.load %arg4[%c0, %c0_0, %c0_1] : memref<1x32x2xf32, #tpu.memory_space<vmem>>, vector<1x32x1xf32>
    %1 = vector.shape_cast %0 : vector<1x32x1xf32> to vector<32x1xf32>
    %c0_2 = arith.constant 0 : index
    %c0_3 = arith.constant 0 : index
    %c1 = arith.constant 1 : index
    %2 = vector.load %arg4[%c0_2, %c0_3, %c1] : memref<1x32x2xf32, #tpu.memory_space<vmem>>, vector<1x32x1xf32>
    %3 = vector.shape_cast %2 : vector<1x32x1xf32> to vector<32x1xf32>
    %c0_4 = arith.constant 0 : index
    %c0_5 = arith.constant 0 : index
    %c0_6 = arith.constant 0 : index
    %4 = vector.load %arg3[%c0_4, %c0_5, %c0_6] : memref<1x32x256xf32, #tpu.memory_space<vmem>>, vector<1x32x256xf32>
    %5 = vector.shape_cast %4 : vector<1x32x256xf32> to vector<32x256xf32>
    %6 = vector.broadcast %1 : vector<32x1xf32> to vector<32x256xf32>
    %7 = arith.mulf %5, %6 : vector<32x256xf32>
    %8 = vector.broadcast %3 : vector<32x1xf32> to vector<32x256xf32>
    %9 = arith.addf %7, %8 : vector<32x256xf32>
    %cst = arith.constant 0.000000e+00 : f32
    %10 = vector.broadcast %cst : f32 to vector<32x256xf32>
    %11 = arith.maximumf %9, %10 : vector<32x256xf32>
    %c0_7 = arith.constant 0 : index
    %c0_8 = arith.constant 0 : index
    %12 = vector.load %arg5[%c0_7, %c0_8] : memref<64x32xf32, #tpu.memory_space<vmem>>, vector<64x32xf32>
    %cst_9 = arith.constant dense<0.000000e+00> : vector<64x256xf32>
    %13 = tpu.matmul %12, %11, %cst_9 {dimension_numbers = #tpu.dot_dimension_numbers<[1], [0], [0], [1], [0, 0, 1, 1], [], []>} : vector<64x32xf32>, vector<32x256xf32>, vector<64x256xf32> -> vector<64x256xf32>
    %c0_10 = arith.constant 0 : index
    %c0_11 = arith.constant 0 : index
    %14 = vector.load %arg6[%c0_10, %c0_11] : memref<64x1xf32, #tpu.memory_space<vmem>>, vector<64x1xf32>
    %15 = vector.broadcast %14 : vector<64x1xf32> to vector<64x256xf32>
    %16 = arith.addf %13, %15 : vector<64x256xf32>
    %c0_12 = arith.constant 0 : index
    %c0_13 = arith.constant 0 : index
    %17 = vector.load %arg7[%c0_12, %c0_13] : memref<64x16xf32, #tpu.memory_space<vmem>>, vector<64x16xf32>
    %c0_14 = arith.constant 0 : index
    %c0_15 = arith.constant 0 : index
    %c0_16 = arith.constant 0 : index
    %18 = vector.load %arg2[%c0_14, %c0_15, %c0_16] : memref<1x16x256xf32, #tpu.memory_space<vmem>>, vector<1x16x256xf32>
    %19 = vector.shape_cast %18 : vector<1x16x256xf32> to vector<16x256xf32>
    %cst_17 = arith.constant dense<0.000000e+00> : vector<64x256xf32>
    %20 = tpu.matmul %17, %19, %cst_17 {dimension_numbers = #tpu.dot_dimension_numbers<[1], [0], [0], [1], [0, 0, 1, 1], [], []>} : vector<64x16xf32>, vector<16x256xf32>, vector<64x256xf32> -> vector<64x256xf32>
    %21 = arith.addf %20, %16 : vector<64x256xf32>
    %c0_18 = arith.constant 0 : index
    %c0_19 = arith.constant 0 : index
    %c0_20 = arith.constant 0 : index
    %22 = vector.load %arg8[%c0_18, %c0_19, %c0_20] : memref<1x64x256xf32, #tpu.memory_space<vmem>>, vector<1x64x256xf32>
    %23 = vector.shape_cast %22 : vector<1x64x256xf32> to vector<64x256xf32>
    %24 = vector.shape_cast %21 : vector<64x256xf32> to vector<1x64x256xf32>
    tpu.vector_store %arg8[%c0_18, %c0_19, %c0_20], %24 {strides = array<i32>} : memref<1x64x256xf32, #tpu.memory_space<vmem>>, vector<1x64x256xf32>,
    return
  }
  func.func @transform_0(%arg0: i32, %arg1: i32) -> (i32, i32, i32) {
    %c0_i32 = arith.constant 0 : i32
    %c0_i32_0 = arith.constant 0 : i32
    return %arg0, %c0_i32, %arg1 : i32, i32, i32
  }
  func.func @transform_1(%arg0: i32, %arg1: i32) -> (i32, i32, i32) {
    %c0_i32 = arith.constant 0 : i32
    %c0_i32_0 = arith.constant 0 : i32
    return %arg0, %c0_i32, %arg1 : i32, i32, i32
  }
  func.func @transform_2(%arg0: i32, %arg1: i32) -> (i32, i32, i32) {
    %c0_i32 = arith.constant 0 : i32
    %c0_i32_0 = arith.constant 0 : i32
    %c0_i32_1 = arith.constant 0 : i32
    return %arg0, %c0_i32, %c0_i32_0 : i32, i32, i32
  }
  func.func @transform_3(%arg0: i32, %arg1: i32) -> (i32, i32) {
    %c0_i32 = arith.constant 0 : i32
    %c0_i32_0 = arith.constant 0 : i32
    %c0_i32_1 = arith.constant 0 : i32
    return %c0_i32, %c0_i32_0 : i32, i32
  }
  func.func @transform_4(%arg0: i32, %arg1: i32) -> (i32, i32) {
    %c0_i32 = arith.constant 0 : i32
    %c0_i32_0 = arith.constant 0 : i32
    %c0_i32_1 = arith.constant 0 : i32
    return %c0_i32, %c0_i32_0 : i32, i32
  }
  func.func @transform_5(%arg0: i32, %arg1: i32) -> (i32, i32) {
    %c0_i32 = arith.constant 0 : i32
    %c0_i32_0 = arith.constant 0 : i32
    %c0_i32_1 = arith.constant 0 : i32
    return %c0_i32, %c0_i32_0 : i32, i32
  }
  func.func @transform_6(%arg0: i32, %arg1: i32) -> (i32, i32, i32) {
    %c0_i32 = arith.constant 0 : i32
    %c0_i32_0 = arith.constant 0 : i32
    return %arg0, %c0_i32, %arg1 : i32, i32, i32
  }
}

module attributes {stable_mosaic.version = 11 : i64} {
  func.func @_stage1_kernel(%arg0: i32, %arg1: i32, %arg2: memref<1x16x256xf32, #tpu.memory_space<vmem>>, %arg3: memref<1x16x2xf32, #tpu.memory_space<vmem>>, %arg4: memref<32x16xf32, #tpu.memory_space<vmem>>, %arg5: memref<32x1xf32, #tpu.memory_space<vmem>>, %arg6: memref<1x32x256xf32, #tpu.memory_space<vmem>>, %arg7: memref<1x1x32x2xf32, #tpu.memory_space<vmem>>) attributes {dimension_semantics = [#tpu.dimension_semantics<parallel>, #tpu.dimension_semantics<parallel>], iteration_bounds = array<i64: 2, 2>, scalar_prefetch = 0 : i64, scratch_operands = 0 : i64, tpu.core_type = #tpu.core_type<tc>, window_params = [{transform_indices = @transform_0, window_bounds = array<i64: 1, 16, 256>}, {transform_indices = @transform_1, window_bounds = array<i64: 1, 16, 2>}, {pipeline_mode = #tpu.pipeline_mode<synchronous>, transform_indices = @transform_2, window_bounds = array<i64: 32, 16>}, {pipeline_mode = #tpu.pipeline_mode<synchronous>, transform_indices = @transform_3, window_bounds = array<i64: 32, 1>}, {transform_indices = @transform_4, window_bounds = array<i64: 1, 32, 256>}, {transform_indices = @transform_5, window_bounds = array<i64: 1, 1, 32, 2>}]} {
    %c0 = arith.constant 0 : index
    %c0_0 = arith.constant 0 : index
    %c0_1 = arith.constant 0 : index
    %0 = vector.load %arg3[%c0, %c0_0, %c0_1] : memref<1x16x2xf32, #tpu.memory_space<vmem>>, vector<1x16x1xf32>
    %1 = vector.shape_cast %0 : vector<1x16x1xf32> to vector<16x1xf32>
    %c0_2 = arith.constant 0 : index
    %c0_3 = arith.constant 0 : index
    %c1 = arith.constant 1 : index
    %2 = vector.load %arg3[%c0_2, %c0_3, %c1] : memref<1x16x2xf32, #tpu.memory_space<vmem>>, vector<1x16x1xf32>
    %3 = vector.shape_cast %2 : vector<1x16x1xf32> to vector<16x1xf32>
    %c0_4 = arith.constant 0 : index
    %c0_5 = arith.constant 0 : index
    %c0_6 = arith.constant 0 : index
    %4 = vector.load %arg2[%c0_4, %c0_5, %c0_6] : memref<1x16x256xf32, #tpu.memory_space<vmem>>, vector<1x16x256xf32>
    %5 = vector.shape_cast %4 : vector<1x16x256xf32> to vector<16x256xf32>
    %6 = vector.broadcast %1 : vector<16x1xf32> to vector<16x256xf32>
    %7 = arith.mulf %5, %6 : vector<16x256xf32>
    %8 = vector.broadcast %3 : vector<16x1xf32> to vector<16x256xf32>
    %9 = arith.addf %7, %8 : vector<16x256xf32>
    %cst = arith.constant 0.000000e+00 : f32
    %10 = vector.broadcast %cst : f32 to vector<16x256xf32>
    %11 = arith.maximumf %9, %10 : vector<16x256xf32>
    %c0_7 = arith.constant 0 : index
    %c0_8 = arith.constant 0 : index
    %12 = vector.load %arg4[%c0_7, %c0_8] : memref<32x16xf32, #tpu.memory_space<vmem>>, vector<32x16xf32>
    %cst_9 = arith.constant dense<0.000000e+00> : vector<32x256xf32>
    %13 = tpu.matmul %12, %11, %cst_9 {dimension_numbers = #tpu.dot_dimension_numbers<[1], [0], [0], [1], [0, 0, 1, 1], [], []>} : vector<32x16xf32>, vector<16x256xf32>, vector<32x256xf32> -> vector<32x256xf32>
    %c0_10 = arith.constant 0 : index
    %c0_11 = arith.constant 0 : index
    %14 = vector.load %arg5[%c0_10, %c0_11] : memref<32x1xf32, #tpu.memory_space<vmem>>, vector<32x1xf32>
    %15 = vector.broadcast %14 : vector<32x1xf32> to vector<32x256xf32>
    %16 = arith.addf %13, %15 : vector<32x256xf32>
    %c0_12 = arith.constant 0 : index
    %c0_13 = arith.constant 0 : index
    %c0_14 = arith.constant 0 : index
    %17 = vector.load %arg6[%c0_12, %c0_13, %c0_14] : memref<1x32x256xf32, #tpu.memory_space<vmem>>, vector<1x32x256xf32>
    %18 = vector.shape_cast %17 : vector<1x32x256xf32> to vector<32x256xf32>
    %19 = vector.shape_cast %16 : vector<32x256xf32> to vector<1x32x256xf32>
    tpu.vector_store %arg6[%c0_12, %c0_13, %c0_14], %19 {strides = array<i32>} : memref<1x32x256xf32, #tpu.memory_space<vmem>>, vector<1x32x256xf32>,
    %cst_15 = arith.constant dense<0.000000e+00> : vector<32xf32>
    %20 = vector.multi_reduction <add>, %16, %cst_15 [1] : vector<32x256xf32> to vector<32xf32>
    %21 = vector.shape_cast %20 : vector<32xf32> to vector<32x1xf32>
    %22 = arith.mulf %16, %16 : vector<32x256xf32>
    %cst_16 = arith.constant dense<0.000000e+00> : vector<32xf32>
    %23 = vector.multi_reduction <add>, %22, %cst_16 [1] : vector<32x256xf32> to vector<32xf32>
    %24 = vector.shape_cast %23 : vector<32xf32> to vector<32x1xf32>
    %25 = tpu.concatenate %21, %24 in 1 : vector<32x1xf32>, vector<32x1xf32> -> vector<32x2xf32>
    %c0_17 = arith.constant 0 : index
    %c0_18 = arith.constant 0 : index
    %c0_19 = arith.constant 0 : index
    %c0_20 = arith.constant 0 : index
    %26 = vector.load %arg7[%c0_17, %c0_18, %c0_19, %c0_20] : memref<1x1x32x2xf32, #tpu.memory_space<vmem>>, vector<1x1x32x2xf32>
    %27 = vector.shape_cast %26 : vector<1x1x32x2xf32> to vector<32x2xf32>
    %28 = vector.shape_cast %25 : vector<32x2xf32> to vector<1x1x32x2xf32>
    tpu.vector_store %arg7[%c0_17, %c0_18, %c0_19, %c0_20], %28 {strides = array<i32>} : memref<1x1x32x2xf32, #tpu.memory_space<vmem>>, vector<1x1x32x2xf32>,
    return
  }
  func.func @transform_0(%arg0: i32, %arg1: i32) -> (i32, i32, i32) {
    %c0_i32 = arith.constant 0 : i32
    %c0_i32_0 = arith.constant 0 : i32
    return %arg0, %c0_i32, %arg1 : i32, i32, i32
  }
  func.func @transform_1(%arg0: i32, %arg1: i32) -> (i32, i32, i32) {
    %c0_i32 = arith.constant 0 : i32
    %c0_i32_0 = arith.constant 0 : i32
    %c0_i32_1 = arith.constant 0 : i32
    return %arg0, %c0_i32, %c0_i32_0 : i32, i32, i32
  }
  func.func @transform_2(%arg0: i32, %arg1: i32) -> (i32, i32) {
    %c0_i32 = arith.constant 0 : i32
    %c0_i32_0 = arith.constant 0 : i32
    %c0_i32_1 = arith.constant 0 : i32
    return %c0_i32, %c0_i32_0 : i32, i32
  }
  func.func @transform_3(%arg0: i32, %arg1: i32) -> (i32, i32) {
    %c0_i32 = arith.constant 0 : i32
    %c0_i32_0 = arith.constant 0 : i32
    %c0_i32_1 = arith.constant 0 : i32
    return %c0_i32, %c0_i32_0 : i32, i32
  }
  func.func @transform_4(%arg0: i32, %arg1: i32) -> (i32, i32, i32) {
    %c0_i32 = arith.constant 0 : i32
    %c0_i32_0 = arith.constant 0 : i32
    return %arg0, %c0_i32, %arg1 : i32, i32, i32
  }
  func.func @transform_5(%arg0: i32, %arg1: i32) -> (i32, i32, i32, i32) {
    %c0_i32 = arith.constant 0 : i32
    %c0_i32_0 = arith.constant 0 : i32
    %c0_i32_1 = arith.constant 0 : i32
    return %arg0, %arg1, %c0_i32, %c0_i32_0 : i32, i32, i32, i32
  }
}

</mosaic_0001>

<bundles_post_ra>
// kernel: cresnet_block_conv1d.2
= control target key start
LH: loop header
LB: loop body
LE: loop exit
PB: predicated region body
PF: predicated region fallthrough
CT: control target
= control target key end

     0   :  { %s888_s18 = smov 0   ;;  %s890_s19 = smov 0   ;;  %s1048_s0 = inlined_call_operand.vmem [shape: f32[2,16,512], index: 0, kind: input, shape index: {}]   ;;  %s1049_s1 = inlined_call_operand.vmem [shape: f32[2,16,2], index: 1, kind: input, shape index: {}]   ;;  %s1050_s2 = inlined_call_operand.vmem [shape: f32[32,16], index: 2, kind: input, shape index: {}]   ;;  %s1051_s3 = inlined_call_operand.vmem [shape: f32[32,1], index: 3, kind: input, shape index: {}]   ;;  %s1052_s4 = inlined_call_operand.vmem [shape: f32[2,32,512], index: 4, kind: output, shape index: {0}]   ;;  %s1053_s5 = inlined_call_operand.vmem [shape: f32[2,2,32,2], index: 5, kind: output, shape index: {1}]  }
   0x1   :  { %s892_s20 = smov 0   ;;  %s894_s21 = smov 0  }
   0x2   :  { %s896_s22 = smov 0   ;;  %s898_s23 = smov 0  }
   0x3   :  { %s900_s24 = smov 0  }
   0x4 LB: > { %s25_s25 = sadd.s32 1, %s845_s22  ;;  %s28_s26 = sadd.s32 1, %s849_s23  ;;  %s853_s24 = sphi %s900_s24, %s16_s24   ;;  %s849_s23 = sphi %s898_s23, %s1060_s23   ;;  %s845_s22 = sphi %s896_s22, %s1059_s22   ;;  %s841_s21 = sphi %s894_s21, %s1058_s21   ;;  %s837_s20 = sphi %s892_s20, %s1057_s20   ;;  %s833_s19 = sphi %s890_s19, %s1056_s19   ;;  %s829_s18 = sphi %s888_s18, %s1055_s18  }
   0x5   : > { %p26_p0 = scmp.ge.s32.totalorder %s25_s25, 2  ;;  %s706_s27 = sadd.s32 4294967295, %s853_s24  }
   0x6   : > { %p44_p1 = scmp.ne.s32.totalorder %s833_s19, %s829_s18  ;;  %p45_p2 = scmp.eq.s32.totalorder %s853_s24, 0 }
   0x7   : > { %s1062_s25 = smov (%p26_p0, %s25_s25), 0  ;;  %s1064_s26 = smov (!%p26_p0, %s28_s26), %s849_s23 }
   0x8   : > { %p30_p3 = scmp.ge.s32.totalorder %s1064_s26, 2  ;;  %p144_p4 = scmp.eq.s32.totalorder %s706_s27, 3 }
   0x9   : > { %s33_s28 = ssub.s32 %s845_s22, %s1062_s25  ;;  %p46_p5 = por %p45_p2, %p44_p1 }
   0xa   : > { %s1066_s26 = smov (%p30_p3, %s1064_s26), 0  ;;  %p936_p6 = por %p144_p4, %p44_p1 }
   0xb   : > { %s32_s30 = ssub.s32 %s849_s23, %s1066_s26  ;;  %s37_s7 = sadd.s32 1, %s833_s19 }
   0xc   : > { %s34_s6 = sor.u32 %s33_s28, %s32_s30  ;;  %p709_p8 = scmp.ge.s32.totalorder %s853_s24, 4 }
   0xd   : > { %p35_p7 = scmp.eq.s32.totalorder %s34_s6, 0 }
   0xe   : > { %200 = sbr.rel (%p709_p8) target bundleno = 28 (0x1c), region = 24 }
   0xf   : > { %s944_s8 = scalar_select %p35_p7, %s833_s19, %s37_s7  }
  0x13   : > { %203 = sbr.rel (!%p46_p5) target bundleno = 28 (0x1c), region = 28  ;;  %s205_s9 = sand.u32 (%p46_p5), 1, %s833_s19  }
  0x14   : > { %s711_s10 = sshll.u32 (%p46_p5), %s845_s22, 1  ;;  %s710_s11 = sshll.u32 (%p46_p5), %s205_s9, 5 }
  0x15   : > { %s712_s12 = sshll.u32 (%p46_p5), %s849_s23, 3  ;;  %s207_s27 = scalar_lea.vmem (%p46_p5), [#allocation2], %s710_s11 }
  0x16   : > { %s210_s13 = sadd.s32 (%p46_p5), %s712_s12, %s711_s10 }
  0x17   : > { %s713_s14 = sshll.u32 (%p46_p5), %s210_s13, 3 }
  0x18   : > { %s212_s17 = scalar_lea.vmem %s1048_s0, %s713_s14 }
  0x19   : > { %v225_v0 = vld [vmem:[%s212_s17] sm:$0xff]  ;;  %v227_v1 = vld [vmem:[%s212_s17 + $0x8] sm:$0xff] }
  0x1a   : > { %v229_v2 = vld [vmem:[%s212_s17 + $0x20] sm:$0xff]  ;;  %226 = vst [vmem:[%s207_s27] sm:$0xff] %v225_v0  ;;  %228 = vst [vmem:[%s207_s27 + $0x8] sm:$0xff] %v227_v1  ;;  %v231_v3 = vld [vmem:[%s212_s17 + $0x28] sm:$0xff] }
  0x1b   : > { %230 = vst [vmem:[%s207_s27 + $0x10] sm:$0xff] %v229_v2  ;;  %232 = vst [vmem:[%s207_s27 + $0x18] sm:$0xff] %v231_v3 }
  0x1c PF: > { %p714_p9 = scmp.ge.s32.totalorder %s853_s24, 1  ;;  %p245_p10 = scmp.lt.s32.totalorder %s853_s24, 5 }
  0x1e   : > { %p246_p11 = pnand %p714_p9, %p245_p10 }
  0x1f   : > { %p293_p12 = scmp.lt.s32.totalorder (!%p246_p11), %s841_s21, 1  ;;  %s252_s27 = sand.u32 (!%p246_p11), 1, %s829_s18  }
  0x20   : > { %249 = sbr.rel (%p246_p11) target bundleno = 533 (0x215), region = 55  ;;  %s716_s16 = sshll.u32 (!%p246_p11), %s252_s27, 6 }
  0x21   : > { %s992_s17 = scalar_lea.vmem (!%p246_p11), [#allocation3], %s716_s16  ;;  %p301_p13 = scmp.lt.s32.totalorder (!%p246_p11), %s837_s20, 1 }
  0x25   : > { %v855_v4 = vmov 1   ;;  %v856_v5 = vmov 0   ;;  %s957_s28 = scalar_select %p293_p12, %s841_s21, 1  ;;  %v348_v8 = vld [vmem:[%s1051_s3] sm:$0xff]  ;;  %v857_v9 = vmov 0.0   ;;  %v350_v10 = vld [vmem:[%s1051_s3 + $0x10] sm:$0xff] }
  0x26   : > { %797 = vset.pattern.permute.xlu1 %v855_v4  ;;  %796 = vset.pattern.permute.xlu0 %v856_v5  ;;  %v349_v11 = vld [vmem:[%s1051_s3 + $0x8] sm:$0xff]  ;;  %v351_v12 = vld [vmem:[%s1051_s3 + $0x18] sm:$0xff]  ;;  %v344_v33 = vld [vmem:[%s1050_s2] sm:$0xff]  ;;  %vm372_vm0 = vcmask 130048   ;;  %s302_s18 = scalar_select %p301_p13, %s837_s20, 1  ;;  %vm514_vm1 = vcmask 7168  }
  0x27   : > { %s732_s30 = sshll.u32 %s957_s28, 4  ;;  %449 = vmatprep.mubr.f32.mxu0 %v857_v9  ;;  %461 = vmatprep.mubr.f32.mxu1 %v857_v9  ;;  %v346_v34 = vld [vmem:[%s1050_s2 + $0x10] sm:$0xff]  ;;  %v345_v35 = vld [vmem:[%s1050_s2 + $0x8] sm:$0xff]  ;;  %v347_v36 = vld [vmem:[%s1050_s2 + $0x18] sm:$0xff]  ;;  %vm519_vm2 = vcmask 15360   ;;  %s728_s12 = sshll.u32 (%p936_p6), %s841_s21, 4 }
  0x28   : > { %s297_s9 = scalar_lea.vmem %s1049_s1, %s732_s30  ;;  %s715_s30 = sshll.u32 %s252_s27, 5 }
  0x29   : > { %v309_v6 = vld [vmem:[%s297_s9 + $0x8] sm:$0xff]  ;;  %v308_v7 = vld [vmem:[%s297_s9] sm:$0xff]  ;;  %s254_s6 = scalar_lea.vmem [#allocation2], %s715_s30  ;;  %s719_s27 = sshll.u32 %s302_s18, 2 }
  0x2a   : > { %333 = vperm.xlu1 %797, %v309_v6   ;;  %321 = vperm.xlu0 %796, %v309_v6   ;;  %v312_v13 = vld [vmem:[%s254_s6 + $0x10] sm:$0xff]  ;;  %v313_v14 = vld [vmem:[%s254_s6 + $0x18] sm:$0xff]  ;;  %v310_v19 = vld [vmem:[%s254_s6] sm:$0xff]  ;;  %s720_s30 = sshll.u32 %s957_s28, 3  ;;  %s727_s28 = sshll.u32 (%p936_p6), %s837_s20, 1 }
  0x2b   : > { %v311_v20 = vld [vmem:[%s254_s6 + $0x8] sm:$0xff]  ;;  %s305_s6 = sadd.s32 %s720_s30, %s719_s27  ;;  %s542_s13 = sadd.s32 (%p936_p6), %s728_s12, %s727_s28 }
  0x2c   : > { %s721_s7 = sshll.u32 %s305_s6, 3  ;;  %s729_s29 = sshll.u32 (%p936_p6), %s542_s13, 3 }
  0x2d   : > { %s307_s11 = scalar_lea.vmem %s1053_s5, %s721_s7  ;;  %s544_s16 = scalar_lea.vmem (%p936_p6), %s1052_s4, %s729_s29 }
  0x2e   : > { %329 = vperm.xlu1 %797, %v308_v7   ;;  %316 = vperm.xlu0 %796, %v308_v7  }
  0x32   : > { %354 = vperm.xlu0 %796, %v348_v8   ;;  %798 = vset.pattern.permute.xlu1 %v856_v5 }
  0x33   : > { %359 = vperm.xlu1 %798, %v349_v11  }
  0x36   : > { %364 = vperm.xlu0 %796, %v350_v10  }
  0x37   : > { %369 = vperm.xlu1 %798, %v351_v12  }
  0xa5   : > { %v334_v15 = vpop.permute.xlu1 %333  ;;  %v322_v16 = vpop.permute.xlu0 %321 }
  0xa6   : > { %v326_v17 = vmul.f32 %v322_v16, %v312_v13  ;;  %v327_v18 = vmul.f32 %v322_v16, %v313_v14 }
  0xa8   : > { %v339_v21 = vadd.f32 %v334_v15, %v327_v18  ;;  %v338_v22 = vadd.f32 %v334_v15, %v326_v17 }
  0xa9   : > { %v317_v23 = vpop.permute.xlu0 %316  ;;  %v330_v28 = vpop.permute.xlu1 %329 }
  0xaa   : > { %v324_v24 = vmul.f32 %v317_v23, %v310_v19  ;;  %v325_v25 = vmul.f32 %v317_v23, %v311_v20  ;;  %v343_v26 = vmax.f32 %v339_v21, 0.0  ;;  %v342_v27 = vmax.f32 %v338_v22, 0.0 }
  0xac   : > { %v336_v29 = vadd.f32 %v330_v28, %v324_v24  ;;  %v337_v30 = vadd.f32 %v330_v28, %v325_v25  ;;  %413 = vmatprep.subr.mxu0 %v343_v26  ;;  %733 = vmatprep.subr.mxu1 %v343_v26 }
  0xad   : > { %414 = vmatpush1.msra.mxu0 %v342_v27  ;;  %735 = vmatpush1.msra.mxu1 %v342_v27  ;;  %v355_v37 = vpop.permute.xlu0 %354 }
  0xae   : > { %v341_v31 = vmax.f32 %v337_v30, 0.0  ;;  %v340_v32 = vmax.f32 %v336_v29, 0.0  ;;  %v360_v38 = vpop.permute.xlu1 %359 }
  0xb0   : > { %415 = vmatprep.subr.mxu0 %v341_v31  ;;  %734 = vmatprep.subr.mxu1 %v341_v31 }
  0xb1   : > { %416 = vmatpush1.msra.mxu0 %v340_v32  ;;  %736 = vmatpush1.msra.mxu1 %v340_v32  ;;  %v365_v39 = vpop.permute.xlu0 %364 }
  0xb2   : > { %722 = vmatmul.mubr.msk.f32.vlgmr.msra.gmra.mxu0 %vm372_vm0, %v344_v33  ;;  %724 = vmatmul.mubr.msk.f32.vlgmr.msra.gmra.mxu1 %vm372_vm0, %v346_v34  ;;  %v370_v44 = vpop.permute.xlu1 %369 }
  0xb3   : > { %455 = vmatprep.mubr.f32.mxu0 %v857_v9  ;;  %467 = vmatprep.mubr.f32.mxu1 %v857_v9 }
  0xb6   : > { %723 = vmatmul.mubr.msk.f32.gmra.mxu0 %vm372_vm0, %v345_v35  ;;  %725 = vmatmul.mubr.msk.f32.gmra.mxu1 %vm372_vm0, %v347_v36 }
 0x172   : > { %v451_v40 = vpop.f32.mrf.mxu0  ;;  %v463_v41 = vpop.f32.mrf.mxu1 }
 0x173   : > { %v452_v42 = vadd.f32 %v451_v40, %v355_v37  ;;  %v464_v43 = vadd.f32 %v463_v41, %v365_v39 }
 0x174   : > { %v453_v45 = vpop.f32.mrf.mxu0  ;;  %v465_v46 = vpop.f32.mrf.mxu1 }
 0x175   : > { %474 = vst [vmem:[%s992_s17] sm:$0xff] %v452_v42  ;;  %478 = vst [vmem:[%s992_s17 + $0x20] sm:$0xff] %v464_v43  ;;  %v454_v47 = vadd.f32 %v453_v45, %v355_v37  ;;  %v466_v48 = vadd.f32 %v465_v46, %v365_v39  ;;  %v494_v51 = vmul.f32 %v452_v42, %v452_v42 }
 0x176   : > { %v457_v49 = vpop.f32.mrf.mxu0  ;;  %v469_v50 = vpop.f32.mrf.mxu1  ;;  %v498_v1 = vmul.f32 %v464_v43, %v464_v43 }
 0x177   : > { %475 = vst [vmem:[%s992_s17 + $0x8] sm:$0xff] %v454_v47  ;;  %479 = vst [vmem:[%s992_s17 + $0x28] sm:$0xff] %v466_v48  ;;  %v458_v52 = vadd.f32 %v457_v49, %v360_v38  ;;  %v470_v53 = vadd.f32 %v469_v50, %v370_v44  ;;  %v482_v54 = vadd.f32 %v454_v47, %v452_v42 }
 0x178   : > { %v495_v55 = vmul.f32 %v454_v47, %v454_v47  ;;  %v459_v56 = vpop.f32.mrf.mxu0  ;;  %v471_v57 = vpop.f32.mrf.mxu1  ;;  %v488_v61 = vadd.f32 %v466_v48, %v464_v43  ;;  %v499_v63 = vmul.f32 %v466_v48, %v466_v48 }
 0x179   : > { %476 = vst [vmem:[%s992_s17 + $0x10] sm:$0xff] %v458_v52  ;;  %480 = vst [vmem:[%s992_s17 + $0x30] sm:$0xff] %v470_v53  ;;  %v460_v58 = vadd.f32 %v459_v56, %v360_v38  ;;  %v472_v59 = vadd.f32 %v471_v57, %v370_v44  ;;  %483 = vadd.xlane.f32.xlu0 %v482_v54  ;;  %v496_v2 = vmul.f32 %v458_v52, %v458_v52 }
 0x17a   : > { %v502_v60 = vadd.f32 %v495_v55, %v494_v51  ;;  %v508_v4 = vadd.f32 %v499_v63, %v498_v1  ;;  %v500_v6 = vmul.f32 %v470_v53, %v470_v53 }
 0x17b   : > { %477 = vst [vmem:[%s992_s17 + $0x18] sm:$0xff] %v460_v58  ;;  %481 = vst [vmem:[%s992_s17 + $0x38] sm:$0xff] %v472_v59  ;;  %v485_v62 = vadd.f32 %v460_v58, %v458_v52  ;;  %v491_v0 = vadd.f32 %v472_v59, %v470_v53  ;;  %v497_v3 = vmul.f32 %v460_v58, %v460_v58 }
 0x17c   : > { %503 = vadd.xlane.f32.xlu1 %v502_v60  ;;  %v501_v7 = vmul.f32 %v472_v59, %v472_v59  ;;  %v557_v21 = vld [vmem:[%s992_s17] sm:$0xff] (%p936_p6) }
 0x17d   : > { %489 = vadd.xlane.f32.xlu0 %v488_v61  ;;  %v505_v5 = vadd.f32 %v497_v3, %v496_v2  ;;  %v565_v25 = vld [vmem:[%s992_s17 + $0x20] sm:$0xff] (%p936_p6)  ;;  %558 = vst [vmem:[%s544_s16] sm:$0xff] (%p936_p6), %v557_v21 }
 0x17e   : > { %v511_v8 = vadd.f32 %v501_v7, %v500_v6  ;;  %v559_v22 = vld [vmem:[%s992_s17 + $0x8] sm:$0xff] (%p936_p6)  ;;  %566 = vst [vmem:[%s544_s16 + $0x40] sm:$0xff] (%p936_p6), %v565_v25 }
 0x17f   : > { %v567_v26 = vld [vmem:[%s992_s17 + $0x28] sm:$0xff] (%p936_p6)  ;;  %560 = vst [vmem:[%s544_s16 + $0x8] sm:$0xff] (%p936_p6), %v559_v22 }
 0x180   : > { %486 = vadd.xlane.f32.xlu1 %v485_v62  ;;  %v561_v23 = vld [vmem:[%s992_s17 + $0x10] sm:$0xff] (%p936_p6)  ;;  %568 = vst [vmem:[%s544_s16 + $0x48] sm:$0xff] (%p936_p6), %v567_v26 }
 0x181   : > { %492 = vadd.xlane.f32.xlu0 %v491_v0  ;;  %v569_v27 = vld [vmem:[%s992_s17 + $0x30] sm:$0xff] (%p936_p6)  ;;  %562 = vst [vmem:[%s544_s16 + $0x20] sm:$0xff] (%p936_p6), %v561_v23 }
 0x182   : > { %v563_v24 = vld [vmem:[%s992_s17 + $0x18] sm:$0xff] (%p936_p6)  ;;  %570 = vst [vmem:[%s544_s16 + $0x60] sm:$0xff] (%p936_p6), %v569_v27 }
 0x183   : > { %v571_v28 = vld [vmem:[%s992_s17 + $0x38] sm:$0xff] (%p936_p6)  ;;  %564 = vst [vmem:[%s544_s16 + $0x28] sm:$0xff] (%p936_p6), %v563_v24 }
 0x184   : > { %509 = vadd.xlane.f32.xlu1 %v508_v4  ;;  %572 = vst [vmem:[%s544_s16 + $0x68] sm:$0xff] (%p936_p6), %v571_v28 }
 0x185   : > { %506 = vadd.xlane.f32.xlu0 %v505_v5 }
 0x189   : > { %512 = vadd.xlane.f32.xlu0 %v511_v8 }
 0x202   : > { %v484_v9 = vpop.xlane.xlu0 %483 }
 0x205   : > { %v504_v10 = vpop.xlane.xlu1 %503 }
 0x206   : > { %v515_v11 = vsel %vm514_vm1, %v484_v9, %v504_v10  ;;  %v490_v12 = vpop.xlane.xlu0 %489 }
 0x207   : > { %520 = vst.msk [vmem:[%s307_s11] sm:$0xff] %vm519_vm2, %v515_v11 }
 0x209   : > { %v487_v13 = vpop.xlane.xlu1 %486 }
 0x20a   : > { %v493_v14 = vpop.xlane.xlu0 %492 }
 0x20d   : > { %v510_v15 = vpop.xlane.xlu1 %509 }
 0x20e   : > { %v517_v16 = vsel %vm514_vm1, %v490_v12, %v510_v15  ;;  %v507_v17 = vpop.xlane.xlu0 %506 }
 0x20f   : > { %522 = vst.msk [vmem:[%s307_s11 + $0x10] sm:$0xff] %vm519_vm2, %v517_v16  ;;  %v516_v18 = vsel %vm514_vm1, %v487_v13, %v507_v17 }
 0x210   : > { %521 = vst.msk [vmem:[%s307_s11 + $0x8] sm:$0xff] %vm519_vm2, %v516_v18  ;;  %539 = sbr.rel (!%p936_p6) target bundleno = 533 (0x215), region = 63 }
 0x212   : > { %v513_v19 = vpop.xlane.xlu0 %512 }
 0x213   : > { %v518_v20 = vsel %vm514_vm1, %v493_v14, %v513_v19 }
 0x214   : > { %523 = vst.msk [vmem:[%s307_s11 + $0x18] sm:$0xff] %vm519_vm2, %v518_v20 }
 0x215 PF: > { %s16_s24 = sadd.s32 1, %s853_s24   ;;  %s1055_s18 = smov %s833_s19 }
 0x216   : > { %p13_p0 = scmp.ge.s32.totalorder %s16_s24, 6   ;;  %s1056_s19 = smov %s944_s8 }
 0x217   : > { %s1057_s20 = smov %s845_s22  ;;  %s1058_s21 = smov %s849_s23 }
 0x218   : > { %s1059_s22 = smov %s1062_s25  ;;  %s1060_s23 = smov %s1066_s26 }
 0x219   :  { %15 = sbr.rel (!%p13_p0) target bundleno = 4 (0x4), region = 132 }

// kernel: cresnet_block_conv1d.3
= control target key start
LH: loop header
LB: loop body
LE: loop exit
PB: predicated region body
PF: predicated region fallthrough
CT: control target
= control target key end

     0   :  { %s1489_s0 = inlined_call_operand.vmem [shape: f32[2,16,512], index: 0, kind: input, shape index: {}]   ;;  %s1490_s1 = inlined_call_operand.vmem [shape: f32[2,32,512], index: 1, kind: input, shape index: {}]   ;;  %s1491_s2 = inlined_call_operand.vmem [shape: f32[2,32,2], index: 2, kind: input, shape index: {}]   ;;  %s1492_s3 = inlined_call_operand.vmem [shape: f32[64,32], index: 3, kind: input, shape index: {}]   ;;  %s1493_s4 = inlined_call_operand.vmem [shape: f32[64,1], index: 4, kind: input, shape index: {}]   ;;  %s1494_s5 = inlined_call_operand.vmem [shape: f32[64,16], index: 5, kind: input, shape index: {}]   ;;  %s1495_s6 = inlined_call_operand.hbm [shape: f32[2,64,512], index: 6, kind: output, shape index: {}]  }
   0x1   :  { %1496 = sst [smem:[#allocation7_spill]] %s1489_s0 }
   0x2   :  { %11 = vsyncpa [#allocation5], 0 }
   0x3   :  { %13 = vsyncpa [#allocation5 + $0x1], 0  ;;  %s1202_s21 = smov 0   ;;  %s1204_s22 = smov 0  }
   0x4   :  { %s1206_s23 = smov 0   ;;  %s1208_s24 = smov 0  }
   0x5   :  { %s1210_s25 = smov 0   ;;  %s1212_s26 = smov 0  }
   0x6   :  { %s1214_s27 = smov 0   ;;  %s1216_s28 = smov 0  }
   0x7 LB: > { %s941_s29 = sadd.s32 4294967295, %s1158_s28   ;;  %s942_s30 = sadd.s32 4294967294, %s1158_s28   ;;  %s1158_s28 = sphi %s1216_s28, %s19_s28   ;;  %s1154_s27 = sphi %s1214_s27, %s1507_s27   ;;  %s1150_s26 = sphi %s1212_s26, %s1506_s26   ;;  %s1146_s25 = sphi %s1210_s25, %s1505_s25   ;;  %s1142_s24 = sphi %s1208_s24, %s1504_s24   ;;  %s1138_s23 = sphi %s1206_s23, %s1503_s23   ;;  %s1134_s22 = sphi %s1204_s22, %s1502_s22   ;;  %s1130_s21 = sphi %s1202_s21, %s1501_s21  }
   0x8   : > { %s28_s7 = sadd.s32 1, %s1150_s26  ;;  %s31_s8 = sadd.s32 1, %s1154_s27 }
   0x9   : > { %p29_p0 = scmp.ge.s32.totalorder %s28_s7, 2  ;;  %p47_p1 = scmp.ne.s32.totalorder %s1138_s23, %s1134_s22 }
   0xa   : > { %p48_p2 = scmp.eq.s32.totalorder %s1158_s28, 0  ;;  %p196_p5 = scmp.eq.s32.totalorder %s941_s29, 3 }
   0xb   : > { %s1509_s7 = smov (%p29_p0, %s28_s7), 0  ;;  %s1511_s8 = smov (!%p29_p0, %s31_s8), %s1154_s27 }
   0xc   : > { %s36_s9 = ssub.s32 %s1150_s26, %s1509_s7  ;;  %p1254_p3 = por %p48_p2, %p47_p1 }
   0xd   : > { %p33_p4 = scmp.ge.s32.totalorder %s1511_s8, 2  ;;  %p201_p6 = scmp.ne.s32.totalorder %s1134_s22, %s1130_s21 }
   0xe   : > { %p202_p7 = scmp.eq.s32.totalorder %s942_s30, 3  ;;  %p1262_p8 = por %p196_p5, %p47_p1 }
   0xf   : > { %s1513_s8 = smov (%p33_p4, %s1511_s8), 0  ;;  %s40_s15 = sadd.s32 1, %s1138_s23 }
  0x10   : > { %p1266_p9 = por %p202_p7, %p201_p6  ;;  %s35_s13 = ssub.s32 %s1154_s27, %s1513_s8 }
  0x11   : > { %s37_s14 = sor.u32 %s36_s9, %s35_s13  ;;  %p944_p11 = scmp.ge.s32.totalorder %s1158_s28, 4 }
  0x12   : > { %p38_p10 = scmp.eq.s32.totalorder %s37_s14, 0 }
  0x13   : > { %227 = sbr.rel (%p944_p11) target bundleno = 47 (0x2f), region = 28 }
  0x14   : > { %s1274_s16 = scalar_select %p38_p10, %s1138_s23, %s40_s15  }
  0x18   : > { %230 = sbr.rel (!%p1254_p3) target bundleno = 36 (0x24), region = 32  ;;  %s232_s17 = sand.u32 (%p1254_p3), 1, %s1138_s23  }
  0x19   : > { %s946_s18 = sshll.u32 (%p1254_p3), %s1150_s26, 1  ;;  %s945_s19 = sshll.u32 (%p1254_p3), %s232_s17, 5 }
  0x1a   : > { %s947_s20 = sshll.u32 (%p1254_p3), %s1154_s27, 3  ;;  %s1500_s0 = sld [smem:[#allocation7_spill]] (%p1254_p3) }
  0x1b   : > { %s237_s29 = sadd.s32 (%p1254_p3), %s947_s20, %s946_s18  ;;  %s234_s15 = scalar_lea.vmem (%p1254_p3), [#allocation2], %s945_s19 }
  0x1c   : > { %s948_s30 = sshll.u32 (%p1254_p3), %s237_s29, 3 }
  0x20   : > { %s239_s14 = scalar_lea.vmem %s1500_s0, %s948_s30 }
  0x21   : > { %v252_v0 = vld [vmem:[%s239_s14] sm:$0xff]  ;;  %v254_v1 = vld [vmem:[%s239_s14 + $0x8] sm:$0xff] }
  0x22   : > { %v256_v2 = vld [vmem:[%s239_s14 + $0x20] sm:$0xff]  ;;  %253 = vst [vmem:[%s234_s15] sm:$0xff] %v252_v0  ;;  %255 = vst [vmem:[%s234_s15 + $0x8] sm:$0xff] %v254_v1  ;;  %v258_v3 = vld [vmem:[%s239_s14 + $0x28] sm:$0xff] }
  0x23   : > { %257 = vst [vmem:[%s234_s15 + $0x10] sm:$0xff] %v256_v2  ;;  %259 = vst [vmem:[%s234_s15 + $0x18] sm:$0xff] %v258_v3 }
  0x24 PF: > { %265 = sbr.rel (!%p1254_p3) target bundleno = 47 (0x2f), region = 55  ;;  %s267_s17 = sand.u32 (%p1254_p3), 1, %s1138_s23  }
  0x25   : > { %s950_s18 = sshll.u32 (%p1254_p3), %s1150_s26, 1  ;;  %s949_s20 = sshll.u32 (%p1254_p3), %s267_s17, 6 }
  0x26   : > { %s951_s29 = sshll.u32 (%p1254_p3), %s1154_s27, 4  ;;  %s269_s14 = scalar_lea.vmem (%p1254_p3), [#allocation3], %s949_s20 }
  0x27   : > { %s272_s30 = sadd.s32 (%p1254_p3), %s951_s29, %s950_s18 }
  0x28   : > { %s952_s9 = sshll.u32 (%p1254_p3), %s272_s30, 3 }
  0x29   : > { %s274_s0 = scalar_lea.vmem %s1490_s1, %s952_s9 }
  0x2a   : > { %v287_v4 = vld [vmem:[%s274_s0] sm:$0xff]  ;;  %v289_v5 = vld [vmem:[%s274_s0 + $0x8] sm:$0xff] }
  0x2b   : > { %v291_v6 = vld [vmem:[%s274_s0 + $0x20] sm:$0xff]  ;;  %288 = vst [vmem:[%s269_s14] sm:$0xff] %v287_v4  ;;  %290 = vst [vmem:[%s269_s14 + $0x8] sm:$0xff] %v289_v5  ;;  %v293_v7 = vld [vmem:[%s274_s0 + $0x28] sm:$0xff] }
  0x2c   : > { %292 = vst [vmem:[%s269_s14 + $0x10] sm:$0xff] %v291_v6  ;;  %v295_v8 = vld [vmem:[%s274_s0 + $0x40] sm:$0xff]  ;;  %v297_v9 = vld [vmem:[%s274_s0 + $0x48] sm:$0xff]  ;;  %294 = vst [vmem:[%s269_s14 + $0x18] sm:$0xff] %v293_v7 }
  0x2d   : > { %296 = vst [vmem:[%s269_s14 + $0x20] sm:$0xff] %v295_v8  ;;  %298 = vst [vmem:[%s269_s14 + $0x28] sm:$0xff] %v297_v9  ;;  %v299_v10 = vld [vmem:[%s274_s0 + $0x60] sm:$0xff]  ;;  %v301_v11 = vld [vmem:[%s274_s0 + $0x68] sm:$0xff] }
  0x2e   : > { %300 = vst [vmem:[%s269_s14 + $0x30] sm:$0xff] %v299_v10  ;;  %302 = vst [vmem:[%s269_s14 + $0x38] sm:$0xff] %v301_v11 }
  0x2f PF: > { %p953_p12 = scmp.ge.s32.totalorder %s1158_s28, 1  ;;  %p315_p13 = scmp.lt.s32.totalorder %s1158_s28, 5 }
  0x31   : > { %p316_p0 = pnand %p953_p12, %p315_p13 }
  0x32   : > { %p369_p1 = scmp.lt.s32.totalorder (!%p316_p0), %s1146_s25, 1  ;;  %s1301_s20 = sand.u32 (!%p316_p0), 1, %s1134_s22  }
  0x33   : > { %319 = sbr.rel (%p316_p0) target bundleno = 449 (0x1c1), region = 82  ;;  %s954_s29 = sshll.u32 (!%p316_p0), %s1301_s20, 5 }
  0x34   : > { %s324_s30 = scalar_lea.vmem (!%p316_p0), [#allocation2], %s954_s29  ;;  %s956_s15 = sshll.u32 (!%p316_p0), %s1301_s20, 7 }
  0x35   : > { %s1410_s17 = scalar_lea.vmem (!%p316_p0), [#allocation4], %s956_s15  ;;  %s977_s29 = sshll.u32 (!%p316_p0), %s1146_s25, 5 }
  0x36   : > { %s808_s14 = scalar_lea.sflag (!%p316_p0), [#allocation5], %s1301_s20 }
  0x38   : > { %v1160_v12 = vmov 1   ;;  %v1161_v13 = vmov 0   ;;  %s370_s10 = scalar_select %p369_p1, %s1146_s25, 1  ;;  %v652_v18 = vld [vmem:[%s324_s30 + $0x18] sm:$0xff]  ;;  %v651_v19 = vld [vmem:[%s324_s30 + $0x10] sm:$0xff]  ;;  %v650_v20 = vld [vmem:[%s324_s30 + $0x8] sm:$0xff] }
  0x39   : > { %1060 = vset.pattern.permute.xlu1 %v1160_v12  ;;  %1059 = vset.pattern.permute.xlu0 %v1161_v13  ;;  %v649_v21 = vld [vmem:[%s324_s30] sm:$0xff]  ;;  %v1162_v22 = vmov 0.0   ;;  %vm653_vm0 = vcmask 130048   ;;  %v642_v24 = vld [vmem:[%s1494_s5 + $0x8] sm:$0xff]  ;;  %v643_v25 = vld [vmem:[%s1494_s5 + $0x10] sm:$0xff]  ;;  %s955_s30 = sshll.u32 %s1301_s20, 6 }
  0x3a   : > { %s981_s0 = sshll.u32 %s370_s10, 5  ;;  %706 = vmatprep.subr.mxu1 %v652_v18  ;;  %592 = vmatprep.mubr.f32.mxu0 %v1162_v22  ;;  %v641_v23 = vld [vmem:[%s1494_s5] sm:$0xff]  ;;  %v644_v26 = vld [vmem:[%s1494_s5 + $0x18] sm:$0xff]  ;;  %v646_v28 = vld [vmem:[%s1494_s5 + $0x28] sm:$0xff]  ;;  %s331_s9 = scalar_lea.vmem [#allocation3], %s955_s30  ;;  %vm503_vm1 = vcmask 261120  }
  0x3b   : > { %s373_s18 = scalar_lea.vmem %s1491_s2, %s981_s0  ;;  %707 = vmatpush1.msra.mxu1 %v651_v19  ;;  %742 = vmatprep.mubr.f32.mxu1 %v1162_v22  ;;  %v645_v27 = vld [vmem:[%s1494_s5 + $0x20] sm:$0xff]  ;;  %v647_v29 = vld [vmem:[%s1494_s5 + $0x30] sm:$0xff]  ;;  %v648_v30 = vld [vmem:[%s1494_s5 + $0x38] sm:$0xff]  ;;  %s823_s25 = sshll.u32 %s1410_s17, 4  ;;  %s1434_s25 = int_to_ptr.vmem [resolvable:$true] %s823_s25 }
  0x3c   : > { %v378_v14 = vld [vmem:[%s373_s18 + $0x18] sm:$0xff]  ;;  %v377_v15 = vld [vmem:[%s373_s18 + $0x10] sm:$0xff]  ;;  %v376_v16 = vld [vmem:[%s373_s18 + $0x8] sm:$0xff]  ;;  %708 = vmatprep.subr.mxu1 %v650_v20  ;;  %s1066_s10 = scalar_lea.vmem %s1434_s25, 2048  ;;  %s1163_s0 = smov [#allocation4]  }
  0x3d   : > { %428 = vperm.xlu1 %1060, %v378_v14   ;;  %404 = vperm.xlu0 %1059, %v378_v14   ;;  %v375_v17 = vld [vmem:[%s373_s18] sm:$0xff]  ;;  %v456_v32 = vld [vmem:[%s1493_s4 + $0x8] sm:$0xff]  ;;  %v457_v33 = vld [vmem:[%s1493_s4 + $0x10] sm:$0xff]  ;;  %s976_s18 = sshll.u32 %s1142_s24, 1  ;;  %p1067_p2 = scmp.ne.s32.totalorder %s1434_s25, %s1066_s10 }
  0x3e   : > { %709 = vmatpush1.msra.mxu1 %v649_v21  ;;  %v455_v31 = vld [vmem:[%s1493_s4] sm:$0xff]  ;;  %v458_v35 = vld [vmem:[%s1493_s4 + $0x18] sm:$0xff]  ;;  %v461_v36 = vld [vmem:[%s1493_s4 + $0x30] sm:$0xff]  ;;  %s820_s30 = sadd.s32 %s977_s29, %s976_s18  ;;  %s1070_s15 = sshll.u32 %s1163_s0, 4  ;;  %s1071_s15 = int_to_ptr.vmem [resolvable:$false] %s1070_s15 }
  0x3f   : > { %967 = vmatmul.mubr.msk.f32.vlgmr.msra.gmra.mxu1 %vm653_vm0, %v641_v23  ;;  %v459_v34 = vld [vmem:[%s1493_s4 + $0x20] sm:$0xff]  ;;  %v460_v37 = vld [vmem:[%s1493_s4 + $0x28] sm:$0xff]  ;;  %v462_v38 = vld [vmem:[%s1493_s4 + $0x38] sm:$0xff]  ;;  %s978_s24 = sshll.u32 %s820_s30, 7  ;;  %p1068_p3 = pnand %p1067_p2, %p1262_p8 }
  0x40   : > { %748 = vmatprep.mubr.f32.mxu1 %v1162_v22  ;;  %v385_v39 = vld [vmem:[%s331_s9 + $0x30] sm:$0xff]  ;;  %v386_v40 = vld [vmem:[%s331_s9 + $0x38] sm:$0xff]  ;;  %v383_v48 = vld [vmem:[%s331_s9 + $0x20] sm:$0xff]  ;;  %s1432_s19 = scalar_lea.hbm %s1495_s6, %s978_s24  ;;  %s1072_s18 = scalar_lea.vmem %s1071_s15, 4096 }
  0x41   : > { %1061 = vset.pattern.permute.xlu1 %v1161_v13  ;;  %399 = vperm.xlu0 %1059, %v377_v15   ;;  %v384_v49 = vld [vmem:[%s331_s9 + $0x28] sm:$0xff]  ;;  %v381_v57 = vld [vmem:[%s331_s9 + $0x10] sm:$0xff]  ;;  %v382_v58 = vld [vmem:[%s331_s9 + $0x18] sm:$0xff]  ;;  %p1069_p4 = pneg %p1068_p3  ;;  %p1073_p5 = scmp.lt.s32.totalorder %s1434_s25, %s1071_s15 }
  0x42   : > { %394 = vperm.xlu1 %1061, %v376_v16   ;;  %v380_v61 = vld [vmem:[%s331_s9 + $0x8] sm:$0xff]  ;;  %v379_v62 = vld [vmem:[%s331_s9] sm:$0xff]  ;;  %v450_v18 = vld [vmem:[%s1492_s3 + $0x18] sm:$0xff]  ;;  %p1074_p6 = scmp.lt.s32.totalorder %s1072_s18, %s1066_s10 }
  0x43   : > { %968 = vmatmul.mubr.msk.f32.gmra.mxu1 %vm653_vm0, %v642_v24  ;;  %v451_v19 = vld [vmem:[%s1492_s3 + $0x20] sm:$0xff]  ;;  %v452_v20 = vld [vmem:[%s1492_s3 + $0x28] sm:$0xff]  ;;  %v453_v21 = vld [vmem:[%s1492_s3 + $0x30] sm:$0xff] }
  0x44   : > { %754 = vmatprep.mubr.f32.mxu1 %v1162_v22  ;;  %v454_v23 = vld [vmem:[%s1492_s3 + $0x38] sm:$0xff]  ;;  %p1075_p7 = por %p1074_p6, %p1073_p5 }
  0x45   : > { %1062 = vset.pattern.permute.xlu0 %v1160_v12 }
  0x46   : > { %424 = vperm.xlu0 %1062, %v377_v15   ;;  %389 = vperm.xlu1 %1061, %v375_v17   ;;  %v447_v15 = vld [vmem:[%s1492_s3] sm:$0xff]  ;;  %p1076_p10 = pnand %p1075_p7, %p1069_p4 }
  0x47   : > { %969 = vmatmul.mubr.msk.f32.gmra.mxu1 %vm653_vm0, %v643_v25 }
  0x48   : > { %760 = vmatprep.mubr.f32.mxu1 %v1162_v22 }
  0x4a   : > { %416 = vperm.xlu0 %1062, %v375_v17   ;;  %1063 = vset.pattern.permute.xlu1 %v1160_v12  ;;  %v449_v17 = vld [vmem:[%s1492_s3 + $0x10] sm:$0xff] }
  0x4b   : > { %420 = vperm.xlu1 %1063, %v376_v16   ;;  %970 = vmatmul.mubr.msk.f32.gmra.mxu1 %vm653_vm0, %v644_v26  ;;  %v448_v16 = vld [vmem:[%s1492_s3 + $0x8] sm:$0xff] }
  0x4c   : > { %766 = vmatprep.mubr.f32.mxu1 %v1162_v22 }
  0x4e   : > { %1065 = vset.pattern.permute.xlu0 %v1161_v13 }
  0x4f   : > { %1064 = vset.pattern.permute.xlu1 %v1161_v13  ;;  %971 = vmatmul.mubr.msk.f32.gmra.mxu1 %vm653_vm0, %v645_v27 }
  0x50   : > { %772 = vmatprep.mubr.f32.mxu1 %v1162_v22  ;;  %465 = vperm.xlu1 %1064, %v455_v31  }
  0x51   : > { %470 = vperm.xlu0 %1065, %v456_v32  }
  0x53   : > { %972 = vmatmul.mubr.msk.f32.gmra.mxu1 %vm653_vm0, %v646_v28 }
  0x54   : > { %778 = vmatprep.mubr.f32.mxu1 %v1162_v22  ;;  %475 = vperm.xlu1 %1064, %v457_v33  }
  0x55   : > { %485 = vperm.xlu0 %1065, %v459_v34  }
  0x57   : > { %973 = vmatmul.mubr.msk.f32.gmra.mxu1 %vm653_vm0, %v647_v29 }
  0x58   : > { %784 = vmatprep.mubr.f32.mxu1 %v1162_v22  ;;  %480 = vperm.xlu1 %1064, %v458_v35  }
  0x59   : > { %495 = vperm.xlu0 %1065, %v461_v36  }
  0x5b   : > { %974 = vmatmul.mubr.msk.f32.gmra.mxu1 %vm653_vm0, %v648_v30 }
  0x5c   : > { %490 = vperm.xlu1 %1064, %v460_v37  }
  0x60   : > { %500 = vperm.xlu1 %1064, %v462_v38  }
  0xb8   : > { %v429_v41 = vpop.permute.xlu1 %428  ;;  %v405_v42 = vpop.permute.xlu0 %404 }
  0xb9   : > { %v413_v43 = vmul.f32 %v405_v42, %v385_v39  ;;  %v414_v44 = vmul.f32 %v405_v42, %v386_v40 }
  0xbb   : > { %v438_v45 = vadd.f32 %v429_v41, %v414_v44  ;;  %v437_v46 = vadd.f32 %v429_v41, %v413_v43 }
  0xbc   : > { %v400_v47 = vpop.permute.xlu0 %399 }
  0xbd   : > { %v395_v50 = vpop.permute.xlu1 %394  ;;  %v446_v51 = vmax.f32 %v438_v45, 0.0  ;;  %v445_v52 = vmax.f32 %v437_v46, 0.0  ;;  %v411_v53 = vmul.f32 %v400_v47, %v383_v48  ;;  %v412_v54 = vmul.f32 %v400_v47, %v384_v49 }
  0xbe   : > { %v409_v1 = vmul.f32 %v395_v50, %v381_v57  ;;  %v410_v2 = vmul.f32 %v395_v50, %v382_v58 }
  0xbf   : > { %552 = vmatprep.subr.mxu0 %v446_v51 }
  0xc0   : > { %553 = vmatpush1.msra.mxu0 %v445_v52 }
  0xc1   : > { %v425_v55 = vpop.permute.xlu0 %424  ;;  %v390_v56 = vpop.permute.xlu1 %389 }
  0xc2   : > { %v435_v59 = vadd.f32 %v425_v55, %v411_v53  ;;  %v436_v60 = vadd.f32 %v425_v55, %v412_v54  ;;  %v408_v3 = vmul.f32 %v390_v56, %v380_v61  ;;  %v407_v5 = vmul.f32 %v390_v56, %v379_v62 }
  0xc4   : > { %v443_v63 = vmax.f32 %v435_v59, 0.0  ;;  %v444_v0 = vmax.f32 %v436_v60, 0.0 }
  0xc5   : > { %v417_v4 = vpop.permute.xlu0 %416 }
  0xc6   : > { %v421_v6 = vpop.permute.xlu1 %420  ;;  %554 = vmatprep.subr.mxu0 %v444_v0  ;;  %v432_v7 = vadd.f32 %v417_v4, %v408_v3  ;;  %v431_v10 = vadd.f32 %v417_v4, %v407_v5 }
  0xc7   : > { %v433_v8 = vadd.f32 %v421_v6, %v409_v1  ;;  %v434_v9 = vadd.f32 %v421_v6, %v410_v2  ;;  %555 = vmatpush1.msra.mxu0 %v443_v63 }
  0xc8   : > { %v440_v13 = vmax.f32 %v432_v7, 0.0  ;;  %v439_v14 = vmax.f32 %v431_v10, 0.0 }
  0xc9   : > { %v441_v11 = vmax.f32 %v433_v8, 0.0  ;;  %v442_v12 = vmax.f32 %v434_v9, 0.0 }
  0xcb   : > { %556 = vmatprep.subr.mxu0 %v442_v12  ;;  %v466_v31 = vpop.permute.xlu1 %465 }
  0xcc   : > { %557 = vmatpush1.msra.mxu0 %v441_v11 }
  0xcd   : > { %558 = vmatprep.subr.mxu0 %v440_v13 }
  0xce   : > { %559 = vmatpush1.msra.mxu0 %v439_v14 }
  0xcf   : > { %959 = vmatmul.mubr.msk.f32.vlgmr.msra.gmra.mxu0 %vm503_vm1, %v447_v15  ;;  %v476_v40 = vpop.permute.xlu1 %475 }
  0xd0   : > { %598 = vmatprep.mubr.f32.mxu0 %v1162_v22 }
  0xd3   : > { %960 = vmatmul.mubr.msk.f32.gmra.mxu0 %vm503_vm1, %v448_v16  ;;  %v481_v51 = vpop.permute.xlu1 %480 }
  0xd4   : > { %604 = vmatprep.mubr.f32.mxu0 %v1162_v22 }
  0xd7   : > { %961 = vmatmul.mubr.msk.f32.gmra.mxu0 %vm503_vm1, %v449_v17  ;;  %v491_v3 = vpop.permute.xlu1 %490 }
  0xd8   : > { %610 = vmatprep.mubr.f32.mxu0 %v1162_v22 }
  0xdb   : > { %962 = vmatmul.mubr.msk.f32.gmra.mxu0 %vm503_vm1, %v450_v18 }
  0xdc   : > { %616 = vmatprep.mubr.f32.mxu0 %v1162_v22 }
  0xdf   : > { %963 = vmatmul.mubr.msk.f32.gmra.mxu0 %vm503_vm1, %v451_v19  ;;  %v501_v19 = vpop.permute.xlu1 %500 }
  0xe0   : > { %622 = vmatprep.mubr.f32.mxu0 %v1162_v22 }
  0xe3   : > { %964 = vmatmul.mubr.msk.f32.gmra.mxu0 %vm503_vm1, %v452_v20 }
  0xe4   : > { %628 = vmatprep.mubr.f32.mxu0 %v1162_v22 }
  0xe7   : > { %965 = vmatmul.mubr.msk.f32.gmra.mxu0 %vm503_vm1, %v453_v21 }
  0xe8   : > { %634 = vmatprep.mubr.f32.mxu0 %v1162_v22  ;;  %v471_v22 = vpop.permute.xlu0 %470 }
  0xeb   : > { %966 = vmatmul.mubr.msk.f32.gmra.mxu0 %vm503_vm1, %v454_v23 }
  0xec   : > { %v486_v59 = vpop.permute.xlu0 %485 }
  0xf0   : > { %v496_v12 = vpop.permute.xlu0 %495 }
  0xff   : > { %v744_v24 = vpop.f32.mrf.mxu1 }
 0x101   : > { %v746_v25 = vpop.f32.mrf.mxu1 }
 0x103   : > { %v750_v26 = vpop.f32.mrf.mxu1 }
 0x105   : > { %v752_v27 = vpop.f32.mrf.mxu1 }
 0x107   : > { %v756_v28 = vpop.f32.mrf.mxu1 }
 0x109   : > { %v758_v29 = vpop.f32.mrf.mxu1 }
 0x10b   : > { %v762_v30 = vpop.f32.mrf.mxu1 }
 0x10d   : > { %v764_v33 = vpop.f32.mrf.mxu1 }
 0x10f   : > { %v768_v39 = vpop.f32.mrf.mxu1 }
 0x111   : > { %v770_v47 = vpop.f32.mrf.mxu1 }
 0x113   : > { %v774_v55 = vpop.f32.mrf.mxu1 }
 0x115   : > { %v776_v63 = vpop.f32.mrf.mxu1 }
 0x117   : > { %v780_v7 = vpop.f32.mrf.mxu1 }
 0x119   : > { %v782_v15 = vpop.f32.mrf.mxu1 }
 0x18f   : > { %v594_v32 = vpop.f32.mrf.mxu0 }
 0x190   : > { %v595_v34 = vadd.f32 %v594_v32, %v466_v31 }
 0x191   : > { %v596_v35 = vpop.f32.mrf.mxu0 }
 0x192   : > { %v745_v36 = vadd.f32 %v744_v24, %v595_v34  ;;  %v597_v37 = vadd.f32 %v596_v35, %v466_v31  ;;  %v786_v24 = vpop.f32.mrf.mxu1 }
 0x193   : > { %v600_v38 = vpop.f32.mrf.mxu0 }
 0x194   : > { %791 = vst [vmem:[%s1410_s17] sm:$0xff] %v745_v36  ;;  %v747_v41 = vadd.f32 %v746_v25, %v597_v37  ;;  %v601_v42 = vadd.f32 %v600_v38, %v471_v22 }
 0x195   : > { %v602_v43 = vpop.f32.mrf.mxu0 }
 0x196   : > { %792 = vst [vmem:[%s1410_s17 + $0x8] sm:$0xff] %v747_v41  ;;  %v751_v44 = vadd.f32 %v750_v26, %v601_v42  ;;  %v603_v45 = vadd.f32 %v602_v43, %v471_v22 }
 0x197   : > { %v606_v46 = vpop.f32.mrf.mxu0 }
 0x198   : > { %793 = vst [vmem:[%s1410_s17 + $0x10] sm:$0xff] %v751_v44  ;;  %v753_v48 = vadd.f32 %v752_v27, %v603_v45  ;;  %v607_v49 = vadd.f32 %v606_v46, %v476_v40 }
 0x199   : > { %v608_v50 = vpop.f32.mrf.mxu0 }
 0x19a   : > { %794 = vst [vmem:[%s1410_s17 + $0x18] sm:$0xff] %v753_v48  ;;  %v757_v52 = vadd.f32 %v756_v28, %v607_v49  ;;  %v609_v53 = vadd.f32 %v608_v50, %v476_v40 }
 0x19b   : > { %v612_v54 = vpop.f32.mrf.mxu0 }
 0x19c   : > { %795 = vst [vmem:[%s1410_s17 + $0x20] sm:$0xff] %v757_v52  ;;  %v759_v56 = vadd.f32 %v758_v29, %v609_v53  ;;  %v613_v57 = vadd.f32 %v612_v54, %v481_v51 }
 0x19d   : > { %v614_v58 = vpop.f32.mrf.mxu0 }
 0x19e   : > { %796 = vst [vmem:[%s1410_s17 + $0x28] sm:$0xff] %v759_v56  ;;  %v763_v60 = vadd.f32 %v762_v30, %v613_v57  ;;  %v615_v61 = vadd.f32 %v614_v58, %v481_v51  ;;  %v788_v30 = vpop.f32.mrf.mxu1 }
 0x19f   : > { %v618_v62 = vpop.f32.mrf.mxu0 }
 0x1a0   : > { %797 = vst [vmem:[%s1410_s17 + $0x30] sm:$0xff] %v763_v60  ;;  %v765_v0 = vadd.f32 %v764_v33, %v615_v61  ;;  %v619_v1 = vadd.f32 %v618_v62, %v486_v59 }
 0x1a1   : > { %v620_v2 = vpop.f32.mrf.mxu0 }
 0x1a2   : > { %798 = vst [vmem:[%s1410_s17 + $0x38] sm:$0xff] %v765_v0  ;;  %v769_v4 = vadd.f32 %v768_v39, %v619_v1  ;;  %v621_v5 = vadd.f32 %v620_v2, %v486_v59 }
 0x1a3   : > { %v624_v6 = vpop.f32.mrf.mxu0 }
 0x1a4   : > { %799 = vst [vmem:[%s1410_s17 + $0x40] sm:$0xff] %v769_v4  ;;  %v771_v8 = vadd.f32 %v770_v47, %v621_v5  ;;  %v625_v9 = vadd.f32 %v624_v6, %v491_v3 }
 0x1a5   : > { %v626_v10 = vpop.f32.mrf.mxu0 }
 0x1a6   : > { %800 = vst [vmem:[%s1410_s17 + $0x48] sm:$0xff] %v771_v8  ;;  %v775_v11 = vadd.f32 %v774_v55, %v625_v9  ;;  %v627_v13 = vadd.f32 %v626_v10, %v491_v3 }
 0x1a7   : > { %v630_v14 = vpop.f32.mrf.mxu0 }
 0x1a8   : > { %801 = vst [vmem:[%s1410_s17 + $0x50] sm:$0xff] %v775_v11  ;;  %v777_v16 = vadd.f32 %v776_v63, %v627_v13  ;;  %v631_v17 = vadd.f32 %v630_v14, %v496_v12 }
 0x1a9   : > { %v632_v18 = vpop.f32.mrf.mxu0 }
 0x1aa   : > { %802 = vst [vmem:[%s1410_s17 + $0x58] sm:$0xff] %v777_v16  ;;  %v781_v20 = vadd.f32 %v780_v7, %v631_v17  ;;  %v633_v21 = vadd.f32 %v632_v18, %v496_v12 }
 0x1ab   : > { %v636_v23 = vpop.f32.mrf.mxu0 }
 0x1ac   : > { %803 = vst [vmem:[%s1410_s17 + $0x60] sm:$0xff] %v781_v20  ;;  %v783_v25 = vadd.f32 %v782_v15, %v633_v21  ;;  %v637_v26 = vadd.f32 %v636_v23, %v501_v19 }
 0x1ad   : > { %v638_v27 = vpop.f32.mrf.mxu0 }
 0x1ae   : > { %804 = vst [vmem:[%s1410_s17 + $0x68] sm:$0xff] %v783_v25  ;;  %v787_v28 = vadd.f32 %v786_v24, %v637_v26  ;;  %v639_v29 = vadd.f32 %v638_v27, %v501_v19 }
 0x1b0   : > { %805 = vst [vmem:[%s1410_s17 + $0x70] sm:$0xff] %v787_v28  ;;  %v789_v31 = vadd.f32 %v788_v30, %v639_v29 }
 0x1b2   : > { %806 = vst [vmem:[%s1410_s17 + $0x78] sm:$0xff] %v789_v31 }
 0x1b3   : > { %1079 = shalt.err (!%p1076_p10)
}
 0x1b4   : > { %s1080_s17 = scalar_lea.hbm %s1432_s19, 2048  ;;  %s1084_s24 = scalar_lea.hbm %s1495_s6, 8192 }
 0x1b5   : > { %p1081_p11 = scmp.ne.s32.totalorder %s1432_s19, %s1080_s17  ;;  %p1085_p0 = scmp.lt.s32.totalorder %s1432_s19, %s1495_s6 }
 0x1b6   : > { %p1086_p1 = scmp.lt.s32.totalorder %s1084_s24, %s1080_s17 }
 0x1b7   : > { %p1082_p12 = pnand %p1081_p11, %p1262_p8 }
 0x1b8   : > { %p1087_p2 = por %p1086_p1, %p1085_p0 }
 0x1b9   : > { %p1083_p13 = pneg %p1082_p12 }
 0x1bb   : > { %p1088_p3 = pnand %p1087_p2, %p1083_p13 }
 0x1bd   : > { %1091 = shalt.err (!%p1088_p3)
}
 0x1be   : > { %s1164_s10 = smov 256   ;;  %s1165_s0 = smov 512  }
 0x1bf   : > { %s1166_s15 = smov 16  }
 0x1c0   : > { %982 = dma.vmem_to_hbm [thread:$0]  (%p1262_p8), %s1434_s25, 2048, %s1432_s19, %s808_s14, %s1164_s10, %s1165_s0, %s1166_s15  }
 0x1c1 PF: > { %p988_p4 = scmp.ge.s32.totalorder %s1158_s28, 2  ;;  %s838_s18 = sand.u32 1, %s1130_s21  }
 0x1c2   : > { %s839_s17 = scalar_lea.sflag [#allocation5], %s838_s18 }
 0x1c3   : > { %p985_p5 = pnand %p988_p4, %p1266_p9 }
 0x1c5   : > { %p986_p6 = pneg %p985_p5 }
 0x1c7   : > { %1125 = dma.done.wait (%p986_p6), %s839_s17, 2048  }
 0x1c8   : > { %1127 = vsyncadd (%p986_p6), %s839_s17, 4294965248  ;;  %s19_s28 = sadd.s32 1, %s1158_s28   ;;  %s1501_s21 = smov %s1134_s22 }
 0x1c9   : > { %p16_p7 = scmp.ge.s32.totalorder %s19_s28, 6   ;;  %s1502_s22 = smov %s1138_s23 }
 0x1ca   : > { %s1503_s23 = smov %s1274_s16  ;;  %s1504_s24 = smov %s1150_s26 }
 0x1cb   : > { %s1505_s25 = smov %s1154_s27  ;;  %s1506_s26 = smov %s1509_s7 }
 0x1cc   : > { %s1507_s27 = smov %s1513_s8  ;;  %18 = sbr.rel (!%p16_p7) target bundleno = 7 (0x7), region = 141 }
 0x1d1   :  { %844 = vsyncpa [#allocation5], 1 }
 0x1d2   :  { %846 = vsyncpa [#allocation5 + $0x1], 1 }

</bundles_post_ra>
